<compile_context>
chip_gen: v7x
topology: tpu7x:2x2x1
jax: 0.10.0
libtpu: 0.0.40
codegen_flags: <defaults>
</compile_context>

<pallas_src>
import numpy as np
import jax
import jax.numpy as jnp
from jax.experimental import pallas as pl
from jax.experimental.pallas import tpu as pltpu


# ----------------------------------------------------------------------------- filter
def make_lpf_filter(window_size: int) -> np.ndarray:
    """Deterministic filter construction matching the PyTorch __init__ (host-side)."""
    w = window_size
    v = np.linspace(-128.0, 128.0, w + 1)
    v = np.roll(v, w // 2)
    h = 1.0 / (v * v + 1.0)
    f = np.real(np.fft.ifft(h))
    f = np.roll(f, w // 2)
    return f.astype(np.float32)  # shape (W+1,)


def _build_toeplitz(filt: np.ndarray, L: int, Lout: int, pad: int, groups: int) -> np.ndarray:
    """Banded Toeplitz T with y = x @ T == zero-padded FIR.  Block-diagonal over groups
    so G independent signals packed along the lane axis do not mix."""
    n_taps = filt.shape[0]
    T = np.zeros((L, Lout), np.float32)
    j = np.arange(L)[:, None]
    i = np.arange(Lout)[None, :]
    k = j - i + pad
    m = (k >= 0) & (k < n_taps)
    T[m] = filt[k[m]]
    if groups == 1:
        return T
    TG = np.zeros((groups * L, groups * Lout), np.float32)
    for g in range(groups):
        TG[g * L:(g + 1) * L, g * Lout:(g + 1) * Lout] = T
    return TG


def _build_band(filt: np.ndarray, tile_l: int) -> np.ndarray:
    """Overlap-save band matrix B[j, i] = f[j - i] for 0 <= j-i <= W, shape (tile_l+W, tile_l).
    Chunk edges (zero padding) are handled by statically trimming B's rows in the kernel."""
    n_taps = filt.shape[0]
    W = n_taps - 1
    B = np.zeros((tile_l + W, tile_l), np.float32)
    j = np.arange(tile_l + W)[:, None]
    i = np.arange(tile_l)[None, :]
    k = j - i
    m = (k >= 0) & (k < n_taps)
    B[m] = filt[k[m]]
    return B


# ----------------------------------------------------------------------------- chip tuning
def _chip_generation() -> str:
    try:
        kind = jax.devices()[0].device_kind.lower()
    except Exception:
        return "unknown"
    for g in ("v5", "v6", "v7"):
        if g in kind:
            return g
    return "unknown"


def _vmem_physical_bytes(gen: str) -> int:
    try:
        cap = getattr(pltpu.get_tpu_info(), "vmem_capacity_bytes", None)
        if cap:
            return int(cap)
    except Exception:
        pass
    return {"v5": 128 << 20, "v6": 128 << 20, "v7": 64 << 20}.get(gen, 64 << 20)


def _chip_params() -> dict:
    gen = _chip_generation()
    phys = _vmem_physical_bytes(gen)
    vmem_limit = int(min(phys * 3 // 4, 100 << 20))   # v5e/v6e: ~96 MiB, v7x: ~48 MiB
    tile_budget = vmem_limit * 3 // 4                 # headroom for Mosaic-internal scratch
    wide = gen in ("v6", "v7")                        # 256x256 MXU generations
    return {
        "gen": gen,
        "vmem_limit": vmem_limit,
        "tile_budget": tile_budget,
        "fold_lanes": 256 if wide else 128,
        "tile_l": 256 if wide else 128,
        "two_cores": gen == "v7",
        # HIGH on v7x keeps the 256-wide fold / 256-col chunks below the 3.2 TB/s HBM
        # crossover; HIGHEST elsewhere (free while HBM-bound).  Never below HIGH.
        "precision": jax.lax.Precision.HIGH if gen == "v7" else jax.lax.Precision.HIGHEST,
    }


def _pick_row_tile(n_rows, *, vmem_bytes_per_row, hbm_bytes_per_row, fixed_bytes,
                   budget, sublane=8, split_two_cores=False, cap=4096):
    """Bytes-based row-tile selection (multi-MiB per grid step), with an optional
    two-step minimum so both v7x TensorCores get work."""
    avail = max(int(budget) - int(fixed_bytes), 2 << 20)
    tr = avail // max(int(vmem_bytes_per_row), 1)
    tr = min(int(tr), cap)
    tr = max(sublane, (tr // sublane) * sublane)
    if (split_two_cores and n_rows > sublane
            and n_rows * hbm_bytes_per_row >= (2 << 20)):
        half = ((n_rows + 1) // 2 + sublane - 1) // sublane * sublane
        if half < n_rows:
            tr = min(tr, max(sublane, half))
    return int(n_rows) if n_rows <= tr else int(tr)


# ----------------------------------------------------------------------------- kernels
def _make_matmul_kernel(precision):
    """Path A: lane-folded banded-Toeplitz matmul on the MXU (padding folded into the band)."""
    def kernel(x_ref, t_ref, y_ref):
        y_ref[...] = jnp.dot(
            x_ref[...].astype(jnp.float32),
            t_ref[...],
            precision=precision,
            preferred_element_type=jnp.float32,
        ).astype(y_ref.dtype)
    return kernel


def _make_overlap_save_kernel(n_taps, pad, l_in, l_out, tile_l, precision):
    """Path B: overlap-save banded matmul over static column chunks.

    For output chunk [c0, c0+tlc) the needed input window is x[:, c0-pad : c0+tlc+W-pad];
    parts of that window that fall in the zero-pad region are handled by statically
    trimming rows off the band matrix, so no scratch copy / host padding is needed."""
    W = n_taps - 1
    n_chunks = -(-l_out // tile_l)

    def kernel(x_ref, b_ref, y_ref):
        for c in range(n_chunks):                      # static, unrolled at trace time
            c0 = c * tile_l
            tlc = min(tile_l, l_out - c0)
            lo, hi = c0 - pad, c0 + tlc + (W - pad)
            s, e = max(0, lo), min(l_in, hi)
            row_off = s - lo                           # band rows dropped (left zero-pad)
            wc = e - s
            yc = jnp.dot(
                x_ref[:, s:e].astype(jnp.float32),
                b_ref[row_off:row_off + wc, 0:tlc],
                precision=precision,
                preferred_element_type=jnp.float32,
            )
            y_ref[:, c0:c0 + tlc] = yc.astype(y_ref.dtype)

    return kernel


# ----------------------------------------------------------------------------- wrapper
def lpf_forward(x: jnp.ndarray, window_size: int, filt=None) -> jnp.ndarray:
    if filt is None:
        filt = make_lpf_filter(window_size)
    filt = np.asarray(filt, np.float32)

    w = window_size
    pad = w // 2
    n_taps = w + 1
    orig_shape = x.shape
    L = orig_shape[-1]
    Lout = L + 2 * pad - w                 # == L for even w, L-1 for odd w
    if Lout <= 0:
        return jnp.zeros(orig_shape[:-1] + (max(Lout, 0),), x.dtype)

    R = int(np.prod(orig_shape[:-1])) if x.ndim > 1 else 1
    x2 = x.reshape(R, L)                   # free reshape
    isz = np.dtype(x.dtype).itemsize
    sub = 16 if isz < 4 else 8             # sublane granularity (packed dtypes: 16)

    p = _chip_params()
    cparams = pltpu.CompilerParams(
        dimension_semantics=("parallel",),
        vmem_limit_bytes=int(p["vmem_limit"]),
    )

    if L <= p["fold_lanes"]:
        # ---- Path A: lane-folded banded-Toeplitz MXU matmul (short signals).
        # G signals per kernel row -> ~fold_lanes-lane-dense I/O (full-width vst).
        # AI ~ G*L/4 FLOP/byte stays below each chip's HBM/MXU crossover -> HBM-bound.
        G = max(1, p["fold_lanes"] // L)
        Rp = ((R + G - 1) // G) * G
        if Rp != R:                        # pad a few rows instead of lane-sparse G=1 blocks
            x2 = jnp.pad(x2, ((0, Rp - R), (0, 0)))
        Rg = Rp // G
        Lin_f, Lout_f = G * L, G * Lout
        T = jnp.asarray(_build_toeplitz(filt, L, Lout, pad, G))   # <= ~256 KiB, resident
        t_bytes = Lin_f * Lout_f * 4
        TR = _pick_row_tile(
            Rg,
            vmem_bytes_per_row=2 * isz * Lin_f + 2 * isz * Lout_f + 8 * Lout_f,
            hbm_bytes_per_row=isz * (Lin_f + Lout_f),
            fixed_bytes=2 * t_bytes,
            budget=p["tile_budget"], sublane=sub, split_two_cores=p["two_cores"])
        xg = x2.reshape(Rg, Lin_f)
        out = pl.pallas_call(
            _make_matmul_kernel(p["precision"]),
            out_shape=jax.ShapeDtypeStruct((Rg, Lout_f), x.dtype),
            grid=(pl.cdiv(Rg, TR),),
            in_specs=[
                pl.BlockSpec((TR, Lin_f), lambda i: (i, 0)),       # row tile
                pl.BlockSpec((Lin_f, Lout_f), lambda i: (0, 0)),   # Toeplitz (tiny, resident)
            ],
            out_specs=pl.BlockSpec((TR, Lout_f), lambda i: (i, 0)),
            compiler_params=cparams,
        )(xg, T)
        out = out.reshape(Rp, Lout)[:R]
    else:
        # ---- Path B: long signals -> overlap-save banded MXU matmul chunked along L.
        # AI ~ (TL+W)/4 FLOP/byte -> HBM-bound with TL=128 (v5e) / 256 (v6e, v7x@HIGH).
        TL = p["tile_l"]
        B = jnp.asarray(_build_band(filt, TL))                     # (TL+W, TL), ~270 KiB
        b_bytes = (TL + w) * TL * 4
        TR = _pick_row_tile(
            R,
            vmem_bytes_per_row=2 * isz * L + 2 * isz * Lout + 8 * (2 * TL + w),
            hbm_bytes_per_row=isz * (L + Lout),
            fixed_bytes=2 * b_bytes,
            budget=p["tile_budget"], sublane=sub, split_two_cores=p["two_cores"])
        # TODO(synk): for extreme L (~1e6+) even an 8-row tile exceeds VMEM; that would
        # need grid-level column tiling with halo blocks (not needed for typical sizes).
        out = pl.pallas_call(
            _make_overlap_save_kernel(n_taps, pad, L, Lout, TL, p["precision"]),
            out_shape=jax.ShapeDtypeStruct((R, Lout), x.dtype),
            grid=(pl.cdiv(R, TR),),
            in_specs=[
                pl.BlockSpec((TR, L), lambda i: (i, 0)),           # row tile, full width
                pl.BlockSpec((TL + w, TL), lambda i: (0, 0)),      # band matrix (resident)
            ],
            out_specs=pl.BlockSpec((TR, Lout), lambda i: (i, 0)),
            compiler_params=cparams,
        )(x2, B)

    return out.reshape(orig_shape[:-1] + (Lout,))


# ----------------------------------------------------------------------------- reference
def lpf_reference_np(x: np.ndarray, window_size: int, filt: np.ndarray) -> np.ndarray:
    """Float64 numpy reference of the PyTorch forward (pad + sliding-window matmul)."""
    w = window_size
    pad = w // 2
    xp = np.pad(np.asarray(x, np.float64), [(0, 0)] * (x.ndim - 1) + [(pad, pad)])
    Lout = xp.shape[-1] - w
    out = np.zeros(x.shape[:-1] + (Lout,), np.float64)
    f = np.asarray(filt, np.float64)
    for k in range(w + 1):
        out += f[k] * xp[..., k:k + Lout]
    return out


if __name__ == "__main__":
    window_size = 8                        # even window => output shape == input shape
    filt = make_lpf_filter(window_size)

    key = jax.random.PRNGKey(0)
    k1, k2, k3 = jax.random.split(key, 3)

    # Case 1: small last dim -> lane-folded Toeplitz MXU path (Path A).
    x = jax.random.normal(k1, (2, 4, 16, 16), dtype=jnp.float32)
    y = jax.block_until_ready(lpf_forward(x, window_size, filt))
    assert y.shape == x.shape, (y.shape, x.shape)
    np.testing.assert_allclose(
        np.asarray(y), lpf_reference_np(np.asarray(x), window_size, filt),
        rtol=1e-5, atol=1e-5)

    # Case 2: long signal -> overlap-save banded MXU path (Path B).
    x2 = jax.random.normal(k2, (2, 3, 2048), dtype=jnp.float32)
    y2 = jax.block_until_ready(lpf_forward(x2, window_size, filt))
    assert y2.shape == x2.shape, (y2.shape, x2.shape)
    np.testing.assert_allclose(
        np.asarray(y2), lpf_reference_np(np.asarray(x2), window_size, filt),
        rtol=1e-5, atol=1e-5)

    # Case 3: row count not divisible by the fold group -> host row-pad + slice.
    x3 = jax.random.normal(k3, (3, 5, 16), dtype=jnp.float32)
    y3 = jax.block_until_ready(lpf_forward(x3, window_size, filt))
    assert y3.shape == x3.shape, (y3.shape, x3.shape)
    np.testing.assert_allclose(
        np.asarray(y3), lpf_reference_np(np.asarray(x3), window_size, filt),
        rtol=1e-5, atol=1e-5)

    print("KERNEL_OK")
</pallas_src>

<mosaic_0001>
module attributes {stable_mosaic.version = 11 : i64} {
  func.func @kernel(%arg0: i32, %arg1: memref<16x128xf32, #tpu.memory_space<vmem>>, %arg2: memref<128x128xf32, #tpu.memory_space<vmem>>, %arg3: memref<16x128xf32, #tpu.memory_space<vmem>>) attributes {dimension_semantics = [#tpu.dimension_semantics<parallel>], iteration_bounds = array<i64: 1>, scalar_prefetch = 0 : i64, scratch_operands = 0 : i64, tpu.core_type = #tpu.core_type<tc>, window_params = [{transform_indices = @transform_0, window_bounds = array<i64: 16, 128>}, {pipeline_mode = #tpu.pipeline_mode<synchronous>, transform_indices = @transform_1, window_bounds = array<i64: 128, 128>}, {transform_indices = @transform_2, window_bounds = array<i64: 16, 128>}]} {
    %c0 = arith.constant 0 : index
    %c0_0 = arith.constant 0 : index
    %0 = vector.load %arg1[%c0, %c0_0] : memref<16x128xf32, #tpu.memory_space<vmem>>, vector<16x128xf32>
    %c0_1 = arith.constant 0 : index
    %c0_2 = arith.constant 0 : index
    %1 = vector.load %arg2[%c0_1, %c0_2] : memref<128x128xf32, #tpu.memory_space<vmem>>, vector<128x128xf32>
    %cst = arith.constant dense<0.000000e+00> : vector<16x128xf32>
    %2 = tpu.matmul %0, %1, %cst {dimension_numbers = #tpu.dot_dimension_numbers<[1], [0], [0], [1], [0, 0, 1, 1], [], []>, precision = #tpu.contract_precision<fp32>} : vector<16x128xf32>, vector<128x128xf32>, vector<16x128xf32> -> vector<16x128xf32>
    %c0_3 = arith.constant 0 : index
    %c0_4 = arith.constant 0 : index
    %3 = vector.load %arg3[%c0_3, %c0_4] : memref<16x128xf32, #tpu.memory_space<vmem>>, vector<16x128xf32>
    tpu.vector_store %arg3[%c0_3, %c0_4], %2 {strides = array<i32>} : memref<16x128xf32, #tpu.memory_space<vmem>>, vector<16x128xf32>,
    return
  }
  func.func @transform_0(%arg0: i32) -> (i32, i32) {
    %c0_i32 = arith.constant 0 : i32
    %c0_i32_0 = arith.constant 0 : i32
    return %arg0, %c0_i32 : i32, i32
  }
  func.func @transform_1(%arg0: i32) -> (i32, i32) {
    %c0_i32 = arith.constant 0 : i32
    %c0_i32_0 = arith.constant 0 : i32
    %c0_i32_1 = arith.constant 0 : i32
    return %c0_i32, %c0_i32_0 : i32, i32
  }
  func.func @transform_2(%arg0: i32) -> (i32, i32) {
    %c0_i32 = arith.constant 0 : i32
    %c0_i32_0 = arith.constant 0 : i32
    return %arg0, %c0_i32 : i32, i32
  }
}

</mosaic_0001>

<bundles_post_ra>
// kernel: tpu_custom_call.1
= control target key start
LH: loop header
LB: loop body
LE: loop exit
PB: predicated region body
PF: predicated region fallthrough
CT: control target
= control target key end

     0   :  { %7 = vsyncpa [#allocation3], 0  ;;  %s1690_s0 = inlined_call_operand.hbm [shape: f32[16,128], index: 0, kind: input, shape index: {}]   ;;  %s1691_s1 = inlined_call_operand.hbm [shape: f32[128,128], index: 1, kind: input, shape index: {}]   ;;  %s1692_s2 = inlined_call_operand.hbm [shape: f32[16,128], index: 2, kind: output, shape index: {}]  }
   0x1   :  { %8 = vsyncpa [#allocation6], 0 }
   0x2   :  { %9 = vsyncpa [#allocation4], 0  ;;  %s1359_s9 = smov [#allocation2]   ;;  %s1287_s13 = scalar_lea.hbm %s1690_s0, 256 }
   0x3   :  { %s15_s10 = sshll.u32 %s1359_s9, 4  ;;  %p1288_p0 = scmp.ne.s32.totalorder %s1690_s0, %s1287_s13  ;;  %s16_s10 = int_to_ptr.vmem [resolvable:$true] %s15_s10 }
   0x4   :  { %p1291_p1 = scmp.lt.u32.totalorder %s1287_s13, %s1690_s0 }
   0x6   :  { %p1293_p2 = pnand %p1291_p1, %p1288_p0 }
   0x8   :  { %1296 = shalt.err (!%p1293_p2)
}
   0x9   :  { %s1297_s18 = scalar_lea.vmem %s16_s10, 256  ;;  %p1302_p4 = scmp.lt.s32.totalorder %s16_s10, %s16_s10 }
   0xa   :  { %p1298_p3 = scmp.ne.s32.totalorder %s16_s10, %s1297_s18  ;;  %p1303_p5 = scmp.lt.s32.totalorder %s1297_s18, %s1297_s18 }
   0xc   :  { %p1304_p6 = por %p1303_p5, %p1302_p4 }
   0xe   :  { %p1305_p7 = pnand %p1304_p6, %p1298_p3 }
  0x10   :  { %1308 = shalt.err (!%p1305_p7)
}
  0x11   :  { %s1360_s19 = smov 128   ;;  %s1361_s20 = smov 8  }
  0x12   :  { %21 = dma.hbm_to_vmem [thread:$0]  %s1690_s0, 256, %s16_s10, [#allocation3], %s1360_s19, %s1360_s19, %s1361_s20  }
  0x13   :  { %s1362_s23 = smov [#allocation5]   ;;  %s1309_s27 = scalar_lea.hbm %s1691_s1, 2048 }
  0x14   :  { %s27_s24 = sshll.u32 %s1362_s23, 4  ;;  %p1310_p8 = scmp.ne.s32.totalorder %s1691_s1, %s1309_s27  ;;  %s28_s24 = int_to_ptr.vmem [resolvable:$true] %s27_s24 }
  0x15   :  { %p1313_p9 = scmp.lt.u32.totalorder %s1309_s27, %s1691_s1 }
  0x17   :  { %p1315_p10 = pnand %p1313_p9, %p1310_p8 }
  0x19   :  { %1318 = shalt.err (!%p1315_p10)
}
  0x1a   :  { %s1319_s4 = scalar_lea.vmem %s28_s24, 2048  ;;  %p1324_p12 = scmp.lt.s32.totalorder %s28_s24, %s28_s24 }
  0x1b   :  { %p1320_p11 = scmp.ne.s32.totalorder %s28_s24, %s1319_s4  ;;  %p1325_p13 = scmp.lt.s32.totalorder %s1319_s4, %s1319_s4 }
  0x1d   :  { %p1326_p0 = por %p1325_p13, %p1324_p12 }
  0x1f   :  { %p1327_p1 = pnand %p1326_p0, %p1320_p11 }
  0x21   :  { %1330 = shalt.err (!%p1327_p1)
}
  0x22   :  { %33 = dma.hbm_to_vmem [thread:$0]  %s1691_s1, 2048, %s28_s24, [#allocation6], %s1360_s19, %s1360_s19, %s1361_s20  }
  0x23   :  { %1353 = dma.done.wait [#allocation3], 256  }
  0x24   :  { %1354 = vsyncadd [#allocation3], 4294967040 }
  0x25   :  { %1355 = dma.done.wait [#allocation6], 2048  }
  0x26   :  { %1356 = vsyncadd [#allocation6], 4294965248  ;;  %v42_v0 = vld [vmem:[#allocation5] sm:$0xff]  ;;  %v43_v1 = vld [vmem:[#allocation5 + $0x8] sm:$0xff]  ;;  %s1363_s1 = smov [#allocation7]  }
  0x27   :  { %v44_v2 = vld [vmem:[#allocation5 + $0x10] sm:$0xff]  ;;  %v59_v3 = vand.u32 4294901760, %v42_v0  ;;  %v62_v4 = vand.u32 4294901760, %v43_v1  ;;  %v1409_v5 = vld [vmem:[#allocation5 + $0x18] sm:$0xff]  ;;  %v1411_v7 = vld [vmem:[#allocation5 + $0x20] sm:$0xff]  ;;  %s749_s6 = sshll.u32 %s1363_s1, 4  ;;  %s750_s6 = int_to_ptr.vmem [resolvable:$true] %s749_s6 }
  0x28   :  { %v65_v6 = vand.u32 4294901760, %v44_v2  ;;  %v1413_v8 = vld [vmem:[#allocation5 + $0x28] sm:$0xff]  ;;  %v68_v9 = vand.u32 4294901760, %v1409_v5  ;;  %v71_v11 = vand.u32 4294901760, %v1411_v7  ;;  %v1422_v14 = vld [vmem:[#allocation5 + $0x30] sm:$0xff]  ;;  %v1424_v15 = vld [vmem:[#allocation5 + $0x38] sm:$0xff]  ;;  %p1336_p3 = scmp.lt.s32.totalorder %s750_s6, %s750_s6 }
  0x29   :  { %v1416_v10 = vpack.c.bf16 %v62_v4, %v59_v3  ;;  %v74_v12 = vand.u32 4294901760, %v1413_v8  ;;  %v40_v16 = vld [vmem:[#allocation2] sm:$0xff]  ;;  %v77_v19 = vand.u32 4294901760, %v1422_v14  ;;  %v80_v20 = vand.u32 4294901760, %v1424_v15  ;;  %v1442_v21 = vld [vmem:[#allocation5 + $0x40] sm:$0xff]  ;;  %v1444_v22 = vld [vmem:[#allocation5 + $0x48] sm:$0xff] }
  0x2a   :  { %v1420_v13 = vpack.c.bf16 %v68_v9, %v65_v6  ;;  %v1430_v17 = vand.u32 4294901760, %v40_v16  ;;  %v83_v26 = vand.u32 4294901760, %v1442_v21  ;;  %v86_v27 = vand.u32 4294901760, %v1444_v22  ;;  %v1462_v28 = vld [vmem:[#allocation5 + $0x50] sm:$0xff]  ;;  %v1464_v29 = vld [vmem:[#allocation5 + $0x58] sm:$0xff]  ;;  %v1479_v36 = vld [vmem:[#allocation5 + $0x60] sm:$0xff] }
  0x2b   :  { %1081 = vmatprep.subr.bf16.mxu1 %v1416_v10  ;;  %1177 = vmatprep.subr.bf16.mxu0 %v1416_v10  ;;  %v1438_v18 = vpack.c.bf16 %v74_v12, %v71_v11  ;;  %v1458_v25 = vpack.c.bf16 %v80_v20, %v77_v19  ;;  %v89_v31 = vand.u32 4294901760, %v1462_v28  ;;  %v41_v33 = vld [vmem:[#allocation2 + $0x8] sm:$0xff]  ;;  %v92_v35 = vand.u32 4294901760, %v1464_v29  ;;  %v1481_v37 = vld [vmem:[#allocation5 + $0x68] sm:$0xff]  ;;  %v1493_v43 = vld [vmem:[#allocation5 + $0x70] sm:$0xff]  ;;  %s1331_s7 = scalar_lea.vmem %s750_s6, 256 }
  0x2c   :  { %1083 = vmatpush3.bf16.msra.mxu1 %v1416_v10  ;;  %1179 = vmatpush3.bf16.msra.mxu0 %v1416_v10  ;;  %v1447_v23 = vsub.f32 %v40_v16, %v1430_v17  ;;  %v1476_v34 = vpack.c.bf16 %v86_v27, %v83_v26  ;;  %v1483_v38 = vsub.f32 %v42_v0, %v59_v3  ;;  %v1487_v40 = vand.u32 4294901760, %v41_v33  ;;  %v1495_v44 = vld [vmem:[#allocation5 + $0x78] sm:$0xff]  ;;  %p1332_p2 = scmp.ne.s32.totalorder %s750_s6, %s1331_s7  ;;  %p1337_p4 = scmp.lt.s32.totalorder %s1331_s7, %s1331_s7 }
  0x2d   :  { %1085 = vmatprep.subr.bf16.mxu1 %v1420_v13  ;;  %1181 = vmatprep.subr.bf16.mxu0 %v1420_v13  ;;  %v1485_v39 = vsub.f32 %v43_v1, %v62_v4  ;;  %v95_v41 = vand.u32 4294901760, %v1479_v36  ;;  %v98_v42 = vand.u32 4294901760, %v1481_v37  ;;  %v1497_v45 = vsub.f32 %v44_v2, %v65_v6 }
  0x2e   :  { %v141_v24 = vand.u32 4294901760, %v1447_v23  ;;  %v1505_v46 = vpack.c.bf16 %v92_v35, %v89_v31  ;;  %v162_v47 = vand.u32 4294901760, %v1483_v38  ;;  %v1510_v49 = vsub.f32 %v1409_v5, %v68_v9  ;;  %p1338_p5 = por %p1337_p4, %p1336_p3 }
  0x2f   :  { %v169_v48 = vand.u32 4294901760, %v1485_v39  ;;  %v101_v50 = vand.u32 4294901760, %v1493_v43  ;;  %v104_v51 = vand.u32 4294901760, %v1495_v44  ;;  %v1515_v52 = vsub.f32 %v41_v33, %v1487_v40 }
  0x30   :  { %1087 = vmatpush3.bf16.msra.mxu1 %v1420_v13  ;;  %1183 = vmatpush3.bf16.msra.mxu0 %v1420_v13  ;;  %v142_v30 = vsub.f32 %v1447_v23, %v141_v24  ;;  %v1523_v53 = vpack.c.bf16 %v98_v42, %v95_v41  ;;  %v176_v54 = vand.u32 4294901760, %v1497_v45  ;;  %v1529_v55 = vsub.f32 %v1411_v7, %v71_v11  ;;  %p1339_p6 = pnand %p1338_p5, %p1332_p2 }
  0x31   :  { %1089 = vmatprep.subr.bf16.mxu1 %v1438_v18  ;;  %1185 = vmatprep.subr.bf16.mxu0 %v1438_v18  ;;  %v163_v56 = vsub.f32 %v1483_v38, %v162_v47  ;;  %v170_v57 = vsub.f32 %v1485_v39, %v169_v48  ;;  %v183_v58 = vand.u32 4294901760, %v1510_v49  ;;  %v1539_v59 = vsub.f32 %v1413_v8, %v74_v12 }
  0x32   :  { %1007 = vmatprep.mubr.f32.mxu0 %v141_v24  ;;  %v143_v32 = vand.u32 4294901760, %v142_v30  ;;  %v1545_v60 = vpack.c.bf16 %v104_v51, %v101_v50  ;;  %v151_v61 = vand.u32 4294901760, %v1515_v52  ;;  %v177_v62 = vsub.f32 %v1497_v45, %v176_v54 }
  0x33   :  { %v190_v63 = vand.u32 4294901760, %v1529_v55  ;;  %v1555_v0 = vsub.f32 %v1422_v14, %v77_v19  ;;  %v1560_v1 = vsub.f32 %v1424_v15, %v80_v20  ;;  %v164_v2 = vand.u32 4294901760, %v163_v56 }
  0x34   :  { %1091 = vmatpush3.bf16.msra.mxu1 %v1438_v18  ;;  %1187 = vmatpush3.bf16.msra.mxu0 %v1438_v18  ;;  %v171_v3 = vand.u32 4294901760, %v170_v57  ;;  %v184_v4 = vsub.f32 %v1510_v49, %v183_v58  ;;  %v197_v5 = vand.u32 4294901760, %v1539_v59  ;;  %v1208_v6 = vpack.c.bf16 %v169_v48, %v162_v47 }
  0x35   :  { %1093 = vmatprep.subr.bf16.mxu1 %v1458_v25  ;;  %1189 = vmatprep.subr.bf16.mxu0 %v1458_v25  ;;  %v152_v7 = vsub.f32 %v1515_v52, %v151_v61  ;;  %v1570_v8 = vsub.f32 %v1442_v21, %v83_v26  ;;  %v178_v9 = vand.u32 4294901760, %v177_v62  ;;  %v191_v11 = vsub.f32 %v1529_v55, %v190_v63 }
  0x36   :  { %902 = vmatprep.mubr.f32.mxu1 %v143_v32  ;;  %v204_v12 = vand.u32 4294901760, %v1555_v0  ;;  %v211_v14 = vand.u32 4294901760, %v1560_v1  ;;  %v1112_v15 = vpack.c.bf16 %v171_v3, %v164_v2  ;;  %v185_v16 = vand.u32 4294901760, %v184_v4 }
  0x37   :  { %v198_v19 = vsub.f32 %v1539_v59, %v197_v5  ;;  %v1583_v20 = vsub.f32 %v1444_v22, %v86_v27  ;;  %v153_v21 = vand.u32 4294901760, %v152_v7  ;;  %v1212_v24 = vpack.c.bf16 %v183_v58, %v176_v54 }
  0x38   :  { %1095 = vmatpush3.bf16.msra.mxu1 %v1458_v25  ;;  %1191 = vmatpush3.bf16.msra.mxu0 %v1458_v25  ;;  %v218_v26 = vand.u32 4294901760, %v1570_v8  ;;  %v1589_v30 = vsub.f32 %v1462_v28, %v89_v31  ;;  %v205_v32 = vsub.f32 %v1555_v0, %v204_v12  ;;  %v212_v33 = vsub.f32 %v1560_v1, %v211_v14 }
  0x39   :  { %1097 = vmatprep.subr.bf16.mxu1 %v1476_v34  ;;  %1193 = vmatprep.subr.bf16.mxu0 %v1476_v34  ;;  %v1598_v22 = vsub.f32 %v1464_v29, %v92_v35  ;;  %v1116_v27 = vpack.c.bf16 %v185_v16, %v178_v9  ;;  %v192_v47 = vand.u32 4294901760, %v191_v11  ;;  %v199_v48 = vand.u32 4294901760, %v198_v19 }
  0x3a   :  { %v225_v28 = vand.u32 4294901760, %v1583_v20  ;;  %v1216_v31 = vpack.c.bf16 %v197_v5, %v190_v63  ;;  %v219_v54 = vsub.f32 %v1570_v8, %v218_v26  ;;  %v1605_v56 = vsub.f32 %v1479_v36, %v95_v41 }
  0x3b   :  { %v206_v29 = vand.u32 4294901760, %v205_v32  ;;  %v213_v35 = vand.u32 4294901760, %v212_v33  ;;  %v232_v57 = vand.u32 4294901760, %v1589_v30  ;;  %v239_v58 = vand.u32 4294901760, %v1598_v22 }
  0x3c   :  { %1099 = vmatpush3.bf16.msra.mxu1 %v1476_v34  ;;  %1195 = vmatpush3.bf16.msra.mxu0 %v1476_v34  ;;  %v1120_v62 = vpack.c.bf16 %v199_v48, %v192_v47  ;;  %v1613_v63 = vsub.f32 %v1481_v37, %v98_v42  ;;  %v1220_v36 = vpack.c.bf16 %v211_v14, %v204_v12  ;;  %v220_v41 = vand.u32 4294901760, %v219_v54 }
  0x3d   :  { %1101 = vmatprep.subr.bf16.mxu1 %v1505_v46  ;;  %1197 = vmatprep.subr.bf16.mxu0 %v1505_v46  ;;  %v1124_v2 = vpack.c.bf16 %v213_v35, %v206_v29  ;;  %v233_v3 = vsub.f32 %v1589_v30, %v232_v57  ;;  %v240_v4 = vsub.f32 %v1598_v22, %v239_v58  ;;  %v246_v5 = vand.u32 4294901760, %v1605_v56 }
  0x3e   :  { %v253_v37 = vand.u32 4294901760, %v1613_v63  ;;  %v1624_v42 = vsub.f32 %v1493_v43, %v101_v50  ;;  %v1629_v7 = vsub.f32 %v1495_v44, %v104_v51  ;;  %v1224_v9 = vpack.c.bf16 %v225_v28, %v218_v26 }
  0x3f   :  { %v234_v11 = vand.u32 4294901760, %v233_v3  ;;  %v241_v12 = vand.u32 4294901760, %v240_v4  ;;  %v247_v14 = vsub.f32 %v1605_v56, %v246_v5  ;;  %v1228_v51 = vpack.c.bf16 %v239_v58, %v232_v57 }
  0x40   :  { %1103 = vmatpush3.bf16.msra.mxu1 %v1505_v46  ;;  %1199 = vmatpush3.bf16.msra.mxu0 %v1505_v46  ;;  %v254_v16 = vsub.f32 %v1613_v63, %v253_v37  ;;  %v260_v43 = vand.u32 4294901760, %v1624_v42  ;;  %v267_v50 = vand.u32 4294901760, %v1629_v7  ;;  %v1232_v33 = vpack.c.bf16 %v253_v37, %v246_v5 }
  0x41   :  { %1105 = vmatprep.subr.bf16.mxu1 %v1523_v53  ;;  %1201 = vmatprep.subr.bf16.mxu0 %v1523_v53  ;;  %v1132_v44 = vpack.c.bf16 %v241_v12, %v234_v11  ;;  %v248_v19 = vand.u32 4294901760, %v247_v14  ;;  %v1148_v54 = vpack.c.bf16 %v1510_v49, %v1497_v45 }
  0x42   :  { %v268_v26 = vsub.f32 %v1629_v7, %v267_v50 }
  0x44   :  { %1107 = vmatpush3.bf16.msra.mxu1 %v1523_v53  ;;  %1203 = vmatpush3.bf16.msra.mxu0 %v1523_v53  ;;  %v269_v47 = vand.u32 4294901760, %v268_v26 }
  0x45   :  { %1109 = vmatprep.subr.bf16.mxu1 %v1545_v60  ;;  %1205 = vmatprep.subr.bf16.mxu0 %v1545_v60 }
  0x48   :  { %1111 = vmatpush3.bf16.msra.mxu1 %v1545_v60  ;;  %1207 = vmatpush3.bf16.msra.mxu0 %v1545_v60 }
  0x49   :  { %1113 = vmatprep.subr.bf16.mxu1 %v1112_v15  ;;  %1209 = vmatprep.subr.bf16.mxu0 %v1208_v6 }
  0x4b   :  { %903 = vmatmul.mubr.f32.vlgmr.msra.gmra.mrb[0].mxu1 %v153_v21  ;;  %1008 = vmatmul.mubr.f32.vlgmr.msra.gmra.mrb[0].mxu0 %v151_v61  ;;  %v226_v61 = vsub.f32 %v1583_v20, %v225_v28  ;;  %v255_v21 = vand.u32 4294901760, %v254_v16  ;;  %v1236_v28 = vpack.c.bf16 %v267_v50, %v260_v43 }
  0x4c   :  { %1115 = vmatpush3.bf16.msra.mxu1 %v1112_v15  ;;  %1211 = vmatpush3.bf16.msra.mxu0 %v1208_v6 }
  0x4d   :  { %1117 = vmatprep.subr.bf16.mxu1 %v1116_v27  ;;  %1213 = vmatprep.subr.bf16.mxu0 %v1212_v24  ;;  %v227_v6 = vand.u32 4294901760, %v226_v61  ;;  %v1136_v32 = vpack.c.bf16 %v255_v21, %v248_v19 }
  0x4e   :  { %937 = vmatprep.mubr.f32.mxu1 %v1430_v17  ;;  %1042 = vmatprep.mubr.f32.mxu0 %v1430_v17 }
  0x4f   :  { %v1128_v15 = vpack.c.bf16 %v227_v6, %v220_v41 }
  0x50   :  { %1119 = vmatpush3.bf16.msra.mxu1 %v1116_v27  ;;  %1215 = vmatpush3.bf16.msra.mxu0 %v1212_v24  ;;  %v261_v24 = vsub.f32 %v1624_v42, %v260_v43 }
  0x51   :  { %1121 = vmatprep.subr.bf16.mxu1 %v1120_v62  ;;  %1217 = vmatprep.subr.bf16.mxu0 %v1216_v31 }
  0x52   :  { %v262_v27 = vand.u32 4294901760, %v261_v24 }
  0x54   :  { %1123 = vmatpush3.bf16.msra.mxu1 %v1120_v62  ;;  %1219 = vmatpush3.bf16.msra.mxu0 %v1216_v31  ;;  %v1140_v48 = vpack.c.bf16 %v269_v47, %v262_v27  ;;  %v1144_v31 = vpack.c.bf16 %v1485_v39, %v1483_v38  ;;  %v1152_v38 = vpack.c.bf16 %v1539_v59, %v1529_v55 }
  0x55   :  { %1125 = vmatprep.subr.bf16.mxu1 %v1124_v2  ;;  %1221 = vmatprep.subr.bf16.mxu0 %v1220_v36  ;;  %v1156_v39 = vpack.c.bf16 %v1560_v1, %v1555_v0 }
  0x58   :  { %1127 = vmatpush3.bf16.msra.mxu1 %v1124_v2  ;;  %1223 = vmatpush3.bf16.msra.mxu0 %v1220_v36 }
  0x59   :  { %1129 = vmatprep.subr.bf16.mxu1 %v1128_v15  ;;  %1225 = vmatprep.subr.bf16.mxu0 %v1224_v9 }
  0x5c   :  { %1131 = vmatpush3.bf16.msra.mxu1 %v1128_v15  ;;  %1227 = vmatpush3.bf16.msra.mxu0 %v1224_v9 }
  0x5d   :  { %1133 = vmatprep.subr.bf16.mxu1 %v1132_v44  ;;  %1229 = vmatprep.subr.bf16.mxu0 %v1228_v51 }
  0x60   :  { %1135 = vmatpush3.bf16.msra.mxu1 %v1132_v44  ;;  %1231 = vmatpush3.bf16.msra.mxu0 %v1228_v51 }
  0x61   :  { %1137 = vmatprep.subr.bf16.mxu1 %v1136_v32  ;;  %1233 = vmatprep.subr.bf16.mxu0 %v1232_v33 }
  0x64   :  { %1139 = vmatpush3.bf16.msra.mxu1 %v1136_v32  ;;  %1235 = vmatpush3.bf16.msra.mxu0 %v1232_v33 }
  0x65   :  { %1141 = vmatprep.subr.bf16.mxu1 %v1140_v48  ;;  %1237 = vmatprep.subr.bf16.mxu0 %v1236_v28 }
  0x68   :  { %1143 = vmatpush3.bf16.msra.mxu1 %v1140_v48  ;;  %1239 = vmatpush3.bf16.msra.mxu0 %v1236_v28 }
  0x69   :  { %1145 = vmatprep.subr.bf16.mxu1 %v1144_v31  ;;  %1241 = vmatprep.subr.bf16.mxu0 %v1416_v10 }
  0x6b   :  { %938 = vmatmul.mubr.f32.vlgmr.msra.gmra.mrb[0].mxu1 %v1487_v40  ;;  %1043 = vmatmul.mubr.f32.vlgmr.msra.gmra.mrb[0].mxu0 %v1487_v40 }
  0x6c   :  { %1147 = vmatpush3.bf16.msra.mxu1 %v1144_v31  ;;  %1243 = vmatpush3.bf16.msra.mxu0 %v1416_v10  ;;  %v1160_v10 = vpack.c.bf16 %v1583_v20, %v1570_v8 }
  0x6d   :  { %1149 = vmatprep.subr.bf16.mxu1 %v1148_v54  ;;  %1245 = vmatprep.subr.bf16.mxu0 %v1420_v13 }
  0x6e   :  { %972 = vmatprep.mubr.f32.mxu1 %v1447_v23  ;;  %1077 = vmatprep.mubr.f32.mxu0 %v1430_v17  ;;  %v1168_v17 = vpack.c.bf16 %v1613_v63, %v1605_v56 }
  0x70   :  { %1151 = vmatpush3.bf16.msra.mxu1 %v1148_v54  ;;  %1247 = vmatpush3.bf16.msra.mxu0 %v1420_v13  ;;  %v1164_v13 = vpack.c.bf16 %v1598_v22, %v1589_v30 }
  0x71   :  { %1153 = vmatprep.subr.bf16.mxu1 %v1152_v38  ;;  %1249 = vmatprep.subr.bf16.mxu0 %v1438_v18 }
  0x74   :  { %1155 = vmatpush3.bf16.msra.mxu1 %v1152_v38  ;;  %1251 = vmatpush3.bf16.msra.mxu0 %v1438_v18  ;;  %v1172_v18 = vpack.c.bf16 %v1629_v7, %v1624_v42 }
  0x75   :  { %1157 = vmatprep.subr.bf16.mxu1 %v1156_v39  ;;  %1253 = vmatprep.subr.bf16.mxu0 %v1458_v25 }
  0x78   :  { %1159 = vmatpush3.bf16.msra.mxu1 %v1156_v39  ;;  %1255 = vmatpush3.bf16.msra.mxu0 %v1458_v25 }
  0x79   :  { %1161 = vmatprep.subr.bf16.mxu1 %v1160_v10  ;;  %1257 = vmatprep.subr.bf16.mxu0 %v1476_v34 }
  0x7c   :  { %1163 = vmatpush3.bf16.msra.mxu1 %v1160_v10  ;;  %1259 = vmatpush3.bf16.msra.mxu0 %v1476_v34 }
  0x7d   :  { %1165 = vmatprep.subr.bf16.mxu1 %v1164_v13  ;;  %1261 = vmatprep.subr.bf16.mxu0 %v1505_v46 }
  0x80   :  { %1167 = vmatpush3.bf16.msra.mxu1 %v1164_v13  ;;  %1263 = vmatpush3.bf16.msra.mxu0 %v1505_v46 }
  0x81   :  { %1169 = vmatprep.subr.bf16.mxu1 %v1168_v17  ;;  %1265 = vmatprep.subr.bf16.mxu0 %v1523_v53 }
  0x84   :  { %1171 = vmatpush3.bf16.msra.mxu1 %v1168_v17  ;;  %1267 = vmatpush3.bf16.msra.mxu0 %v1523_v53 }
  0x85   :  { %1173 = vmatprep.subr.bf16.mxu1 %v1172_v18  ;;  %1269 = vmatprep.subr.bf16.mxu0 %v1545_v60 }
  0x88   :  { %1175 = vmatpush3.bf16.msra.mxu1 %v1172_v18  ;;  %1271 = vmatpush3.bf16.msra.mxu0 %v1545_v60 }
  0x8b   :  { %973 = vmatmul.mubr.f32.vlgmr.msra.gmra.mrb[0].mxu1 %v1515_v52  ;;  %1078 = vmatmul.mubr.f32.vlgmr.msra.gmra.mrb[0].mxu0 %v1487_v40 }
 0x15e   :  { %v974_v23 = vpop.f32.mrb[0].mxu1  ;;  %v1079_v25 = vpop.f32.mrb[0].mxu0 }
 0x15f   :  { %v1272_v34 = vadd.f32 %v1079_v25, %v974_v23  ;;  %v416_v45 = vpop.f32.mrb[1].mxu1  ;;  %v732_v46 = vpop.f32.mrb[1].mxu0 }
 0x160   :  { %v1273_v49 = vadd.f32 %v732_v46, %v416_v45 }
 0x161   :  { %743 = vst [vmem:[#allocation7 + $0x8] sm:$0xff] %v1272_v34 }
 0x162   :  { %742 = vst [vmem:[#allocation7] sm:$0xff] %v1273_v49 }
 0x163   :  { %1342 = shalt.err (!%p1339_p6)
}
 0x164   :  { %s1343_s10 = scalar_lea.hbm %s1692_s2, 256 }
 0x165   :  { %p1344_p7 = scmp.ne.s32.totalorder %s1692_s2, %s1343_s10  ;;  %p1347_p8 = scmp.lt.u32.totalorder %s1343_s10, %s1692_s2 }
 0x167   :  { %p1349_p9 = pnand %p1347_p8, %p1344_p7 }
 0x169   :  { %1352 = shalt.err (!%p1349_p9)
}
 0x16a   :  { %755 = dma.vmem_to_hbm [thread:$0]  %s750_s6, 256, %s1692_s2, [#allocation4], %s1360_s19, %s1360_s19, %s1361_s20  }
 0x16b   :  { %1357 = dma.done.wait [#allocation4], 256  }
 0x16c   :  { %1358 = vsyncadd [#allocation4], 4294967040 }
 0x16d   :  { %759 = vsyncpa [#allocation3], 1 }
 0x16e   :  { %760 = vsyncpa [#allocation6], 1 }
 0x16f   :  { %761 = vsyncpa [#allocation4], 1 }

</bundles_post_ra>
